<compile_context>
chip_gen: v5e
topology: v5e:2x2
jax: 0.10.0
libtpu: 0.0.40
codegen_flags: <defaults>
</compile_context>

<pallas_src>
import jax
import jax.numpy as jnp
from jax.experimental import pallas as pl
from jax.experimental.pallas import tpu as pltpu

IN_DIM = 256
H1, H2, H3 = 512, 256, 128
OUT_DIM = 10
OUT_PAD = 128            # lane-dense padded output width
MAX_TILE_B = 512         # fits comfortably in VMEM on v5e/v6e/v7x


def _round_up(n, m):
    return ((n + m - 1) // m) * m


def mlp_kernel(x_ref,
               w1_ref, b1_ref,
               w2_ref, b2_ref,
               w3_ref, b3_ref,
               w4_ref, b4_ref,
               o_ref):
    # fc1 + relu        (bf16 x bf16 -> f32 accumulate)
    h = jnp.dot(x_ref[...], w1_ref[...], preferred_element_type=jnp.float32)
    h = jnp.maximum(h + b1_ref[...], 0.0).astype(jnp.bfloat16)
    # fc2 + sigmoid
    h = jnp.dot(h, w2_ref[...], preferred_element_type=jnp.float32)
    h = jax.nn.sigmoid(h + b2_ref[...]).astype(jnp.bfloat16)
    # fc3 + tanh
    h = jnp.dot(h, w3_ref[...], preferred_element_type=jnp.float32)
    h = jnp.tanh(h + b3_ref[...]).astype(jnp.bfloat16)
    # fc4 (padded to 128 output lanes, no activation)
    out = jnp.dot(h, w4_ref[...], preferred_element_type=jnp.float32)
    o_ref[...] = (out + b4_ref[...]).astype(o_ref.dtype)


def fully_connected_nn(x, params):
    """x: (B, 16, 16) float32 -> (B, 10) float32."""
    B = x.shape[0]
    x_flat = x.reshape(B, -1).astype(jnp.bfloat16)          # nn.Flatten + bf16
    (w1, b1), (w2, b2), (w3, b3), (w4, b4) = params

    # Pad the last layer to 128 output columns for lane-dense stores.
    w4p = jnp.zeros((H3, OUT_PAD), w4.dtype).at[:, :OUT_DIM].set(w4)
    b4p = jnp.zeros((1, OUT_PAD), b4.dtype).at[:, :OUT_DIM].set(b4)

    # Batch tiling: sublane-aligned tile, pad batch to a multiple of it.
    tile_b = min(MAX_TILE_B, _round_up(B, 8))
    b_pad = _round_up(B, tile_b)
    if b_pad != B:
        x_flat = jnp.pad(x_flat, ((0, b_pad - B), (0, 0)))
    grid = (b_pad // tile_b,)

    resident = lambda shape: pl.BlockSpec(shape, lambda i: (0, 0))

    flops = 2 * b_pad * (IN_DIM * H1 + H1 * H2 + H2 * H3 + H3 * OUT_PAD)
    transcendentals = b_pad * (H2 + H3)                      # sigmoid + tanh
    bytes_accessed = (b_pad * IN_DIM * 2                     # x (bf16)
                      + (IN_DIM * H1 + H1 * H2 + H2 * H3 + H3 * OUT_PAD) * 2
                      + (H1 + H2 + H3 + OUT_PAD) * 4         # biases (f32)
                      + b_pad * OUT_PAD * 4)                 # output (f32)

    out = pl.pallas_call(
        mlp_kernel,
        out_shape=jax.ShapeDtypeStruct((b_pad, OUT_PAD), jnp.float32),
        grid=grid,
        in_specs=[
            pl.BlockSpec((tile_b, IN_DIM), lambda i: (i, 0)),   # x tile
            resident((IN_DIM, H1)), resident((1, H1)),
            resident((H1, H2)),     resident((1, H2)),
            resident((H2, H3)),     resident((1, H3)),
            resident((H3, OUT_PAD)), resident((1, OUT_PAD)),
        ],
        out_specs=pl.BlockSpec((tile_b, OUT_PAD), lambda i: (i, 0)),
        compiler_params=pltpu.CompilerParams(
            dimension_semantics=("parallel",),
            vmem_limit_bytes=32 * 1024 * 1024),
        cost_estimate=pl.CostEstimate(
            flops=flops,
            transcendentals=transcendentals,
            bytes_accessed=bytes_accessed),
    )(x_flat, w1, b1, w2, b2, w3, b3, w4p, b4p)

    return out[:B, :OUT_DIM]


def init_linear(key, fan_in, fan_out):
    """Mimics torch nn.Linear default init: U(-1/sqrt(fan_in), +1/sqrt(fan_in)).
    Weights stored bf16 (in, out); biases kept f32."""
    kw, kb = jax.random.split(key)
    bound = 1.0 / jnp.sqrt(jnp.float32(fan_in))
    w = jax.random.uniform(kw, (fan_in, fan_out), jnp.float32, -bound, bound)
    b = jax.random.uniform(kb, (1, fan_out), jnp.float32, -bound, bound)
    return w.astype(jnp.bfloat16), b


def make_params(key):
    k1, k2, k3, k4 = jax.random.split(key, 4)
    return (
        init_linear(k1, IN_DIM, H1),
        init_linear(k2, H1, H2),
        init_linear(k3, H2, H3),
        init_linear(k4, H3, OUT_DIM),
    )


def reference(x, params):
    """Pure-JAX f32 reference (same bf16-stored weights upcast to f32)."""
    B = x.shape[0]
    h = x.reshape(B, -1)
    (w1, b1), (w2, b2), (w3, b3), (w4, b4) = params
    h = jnp.maximum(h @ w1.astype(jnp.float32) + b1, 0.0)
    h = jax.nn.sigmoid(h @ w2.astype(jnp.float32) + b2)
    h = jnp.tanh(h @ w3.astype(jnp.float32) + b3)
    return h @ w4.astype(jnp.float32) + b4


if __name__ == "__main__":
    key = jax.random.PRNGKey(0)
    kx, kp = jax.random.split(key)

    # Small deterministic input: batch=2, flattened feature dim = 16*16 = 256.
    x = jax.random.normal(kx, (2, 16, 16), jnp.float32)
    params = make_params(kp)

    out = fully_connected_nn(x, params)
    out = jax.block_until_ready(out)

    ref = reference(x, params)
    assert out.shape == (2, OUT_DIM), out.shape
    # bf16 weights/activations with f32 accumulation -> looser tolerance.
    assert jnp.allclose(out, ref, atol=2e-2, rtol=2e-2), "mismatch vs reference"

    print("KERNEL_OK")
</pallas_src>

<mosaic_0001>
module attributes {stable_mosaic.version = 11 : i64} {
  func.func @mlp_kernel(%arg0: i32, %arg1: memref<8x256xbf16, #tpu.memory_space<vmem>>, %arg2: memref<256x512xbf16, #tpu.memory_space<vmem>>, %arg3: memref<1x512xf32, #tpu.memory_space<vmem>>, %arg4: memref<512x256xbf16, #tpu.memory_space<vmem>>, %arg5: memref<1x256xf32, #tpu.memory_space<vmem>>, %arg6: memref<256x128xbf16, #tpu.memory_space<vmem>>, %arg7: memref<1x128xf32, #tpu.memory_space<vmem>>, %arg8: memref<128x128xbf16, #tpu.memory_space<vmem>>, %arg9: memref<1x128xf32, #tpu.memory_space<vmem>>, %arg10: memref<8x128xf32, #tpu.memory_space<vmem>>) attributes {dimension_semantics = [#tpu.dimension_semantics<parallel>], iteration_bounds = array<i64: 1>, scalar_prefetch = 0 : i64, scratch_operands = 0 : i64, tpu.core_type = #tpu.core_type<tc>, window_params = [{transform_indices = @transform_0, window_bounds = array<i64: 8, 256>}, {pipeline_mode = #tpu.pipeline_mode<synchronous>, transform_indices = @transform_1, window_bounds = array<i64: 256, 512>}, {pipeline_mode = #tpu.pipeline_mode<synchronous>, transform_indices = @transform_2, window_bounds = array<i64: 1, 512>}, {pipeline_mode = #tpu.pipeline_mode<synchronous>, transform_indices = @transform_3, window_bounds = array<i64: 512, 256>}, {pipeline_mode = #tpu.pipeline_mode<synchronous>, transform_indices = @transform_4, window_bounds = array<i64: 1, 256>}, {pipeline_mode = #tpu.pipeline_mode<synchronous>, transform_indices = @transform_5, window_bounds = array<i64: 256, 128>}, {pipeline_mode = #tpu.pipeline_mode<synchronous>, transform_indices = @transform_6, window_bounds = array<i64: 1, 128>}, {pipeline_mode = #tpu.pipeline_mode<synchronous>, transform_indices = @transform_7, window_bounds = array<i64: 128, 128>}, {pipeline_mode = #tpu.pipeline_mode<synchronous>, transform_indices = @transform_8, window_bounds = array<i64: 1, 128>}, {transform_indices = @transform_9, window_bounds = array<i64: 8, 128>}]} {
    %c0 = arith.constant 0 : index
    %c0_0 = arith.constant 0 : index
    %0 = vector.load %arg1[%c0, %c0_0] : memref<8x256xbf16, #tpu.memory_space<vmem>>, vector<8x256xbf16>
    %c0_1 = arith.constant 0 : index
    %c0_2 = arith.constant 0 : index
    %1 = vector.load %arg2[%c0_1, %c0_2] : memref<256x512xbf16, #tpu.memory_space<vmem>>, vector<256x512xbf16>
    %cst = arith.constant dense<0.000000e+00> : vector<8x512xf32>
    %2 = tpu.matmul %0, %1, %cst {dimension_numbers = #tpu.dot_dimension_numbers<[1], [0], [0], [1], [0, 0, 1, 1], [], []>} : vector<8x256xbf16>, vector<256x512xbf16>, vector<8x512xf32> -> vector<8x512xf32>
    %c0_3 = arith.constant 0 : index
    %c0_4 = arith.constant 0 : index
    %3 = vector.load %arg3[%c0_3, %c0_4] : memref<1x512xf32, #tpu.memory_space<vmem>>, vector<1x512xf32>
    %4 = vector.broadcast %3 : vector<1x512xf32> to vector<8x512xf32>
    %5 = arith.addf %2, %4 : vector<8x512xf32>
    %cst_5 = arith.constant 0.000000e+00 : f32
    %6 = vector.broadcast %cst_5 : f32 to vector<8x512xf32>
    %7 = arith.maximumf %5, %6 : vector<8x512xf32>
    %8 = arith.truncf %7 : vector<8x512xf32> to vector<8x512xbf16>
    %c0_6 = arith.constant 0 : index
    %c0_7 = arith.constant 0 : index
    %9 = vector.load %arg4[%c0_6, %c0_7] : memref<512x256xbf16, #tpu.memory_space<vmem>>, vector<512x256xbf16>
    %cst_8 = arith.constant dense<0.000000e+00> : vector<8x256xf32>
    %10 = tpu.matmul %8, %9, %cst_8 {dimension_numbers = #tpu.dot_dimension_numbers<[1], [0], [0], [1], [0, 0, 1, 1], [], []>} : vector<8x512xbf16>, vector<512x256xbf16>, vector<8x256xf32> -> vector<8x256xf32>
    %c0_9 = arith.constant 0 : index
    %c0_10 = arith.constant 0 : index
    %11 = vector.load %arg5[%c0_9, %c0_10] : memref<1x256xf32, #tpu.memory_space<vmem>>, vector<1x256xf32>
    %12 = vector.broadcast %11 : vector<1x256xf32> to vector<8x256xf32>
    %13 = arith.addf %10, %12 : vector<8x256xf32>
    %14 = arith.negf %13 : vector<8x256xf32>
    %15 = math.exp %14 : vector<8x256xf32>
    %cst_11 = arith.constant 1.000000e+00 : f32
    %16 = vector.broadcast %cst_11 : f32 to vector<8x256xf32>
    %17 = arith.addf %16, %15 : vector<8x256xf32>
    %18 = arith.divf %16, %17 : vector<8x256xf32>
    %19 = arith.truncf %18 : vector<8x256xf32> to vector<8x256xbf16>
    %c0_12 = arith.constant 0 : index
    %c0_13 = arith.constant 0 : index
    %20 = vector.load %arg6[%c0_12, %c0_13] : memref<256x128xbf16, #tpu.memory_space<vmem>>, vector<256x128xbf16>
    %cst_14 = arith.constant dense<0.000000e+00> : vector<8x128xf32>
    %21 = tpu.matmul %19, %20, %cst_14 {dimension_numbers = #tpu.dot_dimension_numbers<[1], [0], [0], [1], [0, 0, 1, 1], [], []>} : vector<8x256xbf16>, vector<256x128xbf16>, vector<8x128xf32> -> vector<8x128xf32>
    %c0_15 = arith.constant 0 : index
    %c0_16 = arith.constant 0 : index
    %22 = vector.load %arg7[%c0_15, %c0_16] : memref<1x128xf32, #tpu.memory_space<vmem>>, vector<1x128xf32>
    %23 = vector.broadcast %22 : vector<1x128xf32> to vector<8x128xf32>
    %24 = arith.addf %21, %23 : vector<8x128xf32>
    %25 = math.tanh %24 : vector<8x128xf32>
    %26 = arith.truncf %25 : vector<8x128xf32> to vector<8x128xbf16>
    %c0_17 = arith.constant 0 : index
    %c0_18 = arith.constant 0 : index
    %27 = vector.load %arg8[%c0_17, %c0_18] : memref<128x128xbf16, #tpu.memory_space<vmem>>, vector<128x128xbf16>
    %cst_19 = arith.constant dense<0.000000e+00> : vector<8x128xf32>
    %28 = tpu.matmul %26, %27, %cst_19 {dimension_numbers = #tpu.dot_dimension_numbers<[1], [0], [0], [1], [0, 0, 1, 1], [], []>} : vector<8x128xbf16>, vector<128x128xbf16>, vector<8x128xf32> -> vector<8x128xf32>
    %c0_20 = arith.constant 0 : index
    %c0_21 = arith.constant 0 : index
    %29 = vector.load %arg9[%c0_20, %c0_21] : memref<1x128xf32, #tpu.memory_space<vmem>>, vector<1x128xf32>
    %30 = vector.broadcast %29 : vector<1x128xf32> to vector<8x128xf32>
    %31 = arith.addf %28, %30 : vector<8x128xf32>
    %c0_22 = arith.constant 0 : index
    %c0_23 = arith.constant 0 : index
    %32 = vector.load %arg10[%c0_22, %c0_23] : memref<8x128xf32, #tpu.memory_space<vmem>>, vector<8x128xf32>
    tpu.vector_store %arg10[%c0_22, %c0_23], %31 {strides = array<i32>} : memref<8x128xf32, #tpu.memory_space<vmem>>, vector<8x128xf32>,
    return
  }
  func.func @transform_0(%arg0: i32) -> (i32, i32) {
    %c0_i32 = arith.constant 0 : i32
    %c0_i32_0 = arith.constant 0 : i32
    return %arg0, %c0_i32 : i32, i32
  }
  func.func @transform_1(%arg0: i32) -> (i32, i32) {
    %c0_i32 = arith.constant 0 : i32
    %c0_i32_0 = arith.constant 0 : i32
    %c0_i32_1 = arith.constant 0 : i32
    return %c0_i32, %c0_i32_0 : i32, i32
  }
  func.func @transform_2(%arg0: i32) -> (i32, i32) {
    %c0_i32 = arith.constant 0 : i32
    %c0_i32_0 = arith.constant 0 : i32
    %c0_i32_1 = arith.constant 0 : i32
    return %c0_i32, %c0_i32_0 : i32, i32
  }
  func.func @transform_3(%arg0: i32) -> (i32, i32) {
    %c0_i32 = arith.constant 0 : i32
    %c0_i32_0 = arith.constant 0 : i32
    %c0_i32_1 = arith.constant 0 : i32
    return %c0_i32, %c0_i32_0 : i32, i32
  }
  func.func @transform_4(%arg0: i32) -> (i32, i32) {
    %c0_i32 = arith.constant 0 : i32
    %c0_i32_0 = arith.constant 0 : i32
    %c0_i32_1 = arith.constant 0 : i32
    return %c0_i32, %c0_i32_0 : i32, i32
  }
  func.func @transform_5(%arg0: i32) -> (i32, i32) {
    %c0_i32 = arith.constant 0 : i32
    %c0_i32_0 = arith.constant 0 : i32
    %c0_i32_1 = arith.constant 0 : i32
    return %c0_i32, %c0_i32_0 : i32, i32
  }
  func.func @transform_6(%arg0: i32) -> (i32, i32) {
    %c0_i32 = arith.constant 0 : i32
    %c0_i32_0 = arith.constant 0 : i32
    %c0_i32_1 = arith.constant 0 : i32
    return %c0_i32, %c0_i32_0 : i32, i32
  }
  func.func @transform_7(%arg0: i32) -> (i32, i32) {
    %c0_i32 = arith.constant 0 : i32
    %c0_i32_0 = arith.constant 0 : i32
    %c0_i32_1 = arith.constant 0 : i32
    return %c0_i32, %c0_i32_0 : i32, i32
  }
  func.func @transform_8(%arg0: i32) -> (i32, i32) {
    %c0_i32 = arith.constant 0 : i32
    %c0_i32_0 = arith.constant 0 : i32
    %c0_i32_1 = arith.constant 0 : i32
    return %c0_i32, %c0_i32_0 : i32, i32
  }
  func.func @transform_9(%arg0: i32) -> (i32, i32) {
    %c0_i32 = arith.constant 0 : i32
    %c0_i32_0 = arith.constant 0 : i32
    return %arg0, %c0_i32 : i32, i32
  }
}

</mosaic_0001>

<bundles_post_ra>
// kernel: tpu_custom_call.1
= control target key start
LH: loop header
LB: loop body
LE: loop exit
PB: predicated region body
PF: predicated region fallthrough
CT: control target
= control target key end

     0   :  { %14 = vsyncpa [#allocation3], 0  ;;  %s2509_s0 = inlined_call_operand.hbm [shape: bf16[8,256], index: 0, kind: input, shape index: {}]   ;;  %s2510_s1 = inlined_call_operand.hbm [shape: bf16[256,512], index: 1, kind: input, shape index: {}]   ;;  %s2511_s2 = inlined_call_operand.hbm [shape: f32[1,512], index: 2, kind: input, shape index: {}]   ;;  %s2512_s3 = inlined_call_operand.hbm [shape: bf16[512,256], index: 3, kind: input, shape index: {}]   ;;  %s2513_s4 = inlined_call_operand.vmem [shape: f32[1,256], index: 4, kind: input, shape index: {}]   ;;  %s2514_s5 = inlined_call_operand.hbm [shape: bf16[256,128], index: 5, kind: input, shape index: {}]   ;;  %s2515_s6 = inlined_call_operand.vmem [shape: f32[1,128], index: 6, kind: input, shape index: {}]   ;;  %s2516_s7 = inlined_call_operand.hbm [shape: bf16[128,128], index: 7, kind: input, shape index: {}]   ;;  %s2517_s8 = inlined_call_operand.vmem [shape: f32[1,128], index: 8, kind: input, shape index: {}]   ;;  %s2518_s9 = inlined_call_operand.hbm [shape: f32[8,128], index: 9, kind: output, shape index: {}]  }
   0x1   :  { %15 = vsyncpa [#allocation6], 0 }
   0x2   :  { %16 = vsyncpa [#allocation9], 0 }
   0x3   :  { %17 = vsyncpa [#allocation12], 0  ;;  %s34_s11 = sshll.u32 %s2510_s1, 4  ;;  %s35_s11 = int_to_ptr.hbm [resolvable:$true] %s34_s11 }
   0x4   :  { %18 = vsyncpa [#allocation4], 0  ;;  %s2398_s12 = smov [#allocation5]   ;;  %s58_s16 = sshll.u32 %s2512_s3, 4  ;;  %s59_s16 = int_to_ptr.hbm [resolvable:$true] %s58_s16 }
   0x5   :  { %s36_s13 = sshll.u32 %s2398_s12, 4  ;;  %s2399_s17 = smov 256   ;;  %s37_s13 = int_to_ptr.vmem [resolvable:$true] %s36_s13 }
   0x6   :  { %s2400_s18 = smov 16   ;;  %s2401_s19 = smov [#allocation8]  }
   0x7   :  { %42 = dma.hbm_to_vmem [thread:$0]  %s35_s11, 8192, %s37_s13, [#allocation6], %s2399_s17, %s2399_s17, %s2400_s18  }
   0x8   :  { %s60_s20 = sshll.u32 %s2401_s19, 4  ;;  %s2402_s21 = smov 128   ;;  %s61_s20 = int_to_ptr.vmem [resolvable:$true] %s60_s20 }
   0x9   :  { %s2403_s22 = smov 8   ;;  %s24_s24 = sshll.u32 %s2509_s0, 4  ;;  %s25_s24 = int_to_ptr.hbm [resolvable:$true] %s24_s24 }
   0xa   :  { %66 = dma.hbm_to_vmem [thread:$0]  %s59_s16, 8192, %s61_s20, [#allocation9], %s2402_s21, %s2402_s21, %s2403_s22  }
   0xb   :  { %s2404_s25 = smov [#allocation2]   ;;  %s48_s28 = sshll.u32 %s2511_s2, 4  ;;  %s49_s28 = int_to_ptr.hbm [resolvable:$true] %s48_s28 }
   0xc   :  { %s26_s26 = sshll.u32 %s2404_s25, 4  ;;  %s2405_s29 = smov [#allocation7]   ;;  %s27_s26 = int_to_ptr.vmem [resolvable:$true] %s26_s26 }
   0xd   :  { %29 = dma.hbm_to_vmem [thread:$0]  %s25_s24, 128, %s27_s26, [#allocation3]  }
   0xe   :  { %s50_s30 = sshll.u32 %s2405_s29, 4  ;;  %s73_s12 = sshll.u32 %s2514_s5, 4  ;;  %s51_s30 = int_to_ptr.vmem [resolvable:$true] %s50_s30  ;;  %s74_s12 = int_to_ptr.hbm [resolvable:$true] %s73_s12 }
   0xf   :  { %53 = dma.hbm_to_vmem [thread:$0]  %s49_s28, 64, %s51_s30, [#allocation6]  }
  0x10   :  { %s2406_s0 = smov [#allocation10]   ;;  %s88_s16 = sshll.u32 %s2516_s7, 4  ;;  %s89_s16 = int_to_ptr.hbm [resolvable:$true] %s88_s16 }
  0x11   :  { %s75_s13 = sshll.u32 %s2406_s0, 4  ;;  %s2407_s17 = smov 64   ;;  %s76_s13 = int_to_ptr.vmem [resolvable:$true] %s75_s13 }
  0x12   :  { %s2408_s2 = smov 4   ;;  %s2409_s18 = smov [#allocation11]  }
  0x13   :  { %81 = dma.hbm_to_vmem [thread:$0]  %s74_s12, 2048, %s76_s13, [#allocation9], %s2407_s17, %s2407_s17, %s2408_s2  }
  0x14   :  { %s90_s19 = sshll.u32 %s2409_s18, 4  ;;  %s91_s19 = int_to_ptr.vmem [resolvable:$true] %s90_s19 }
  0x15   :  { %96 = dma.hbm_to_vmem [thread:$0]  %s89_s16, 1024, %s91_s19, [#allocation12], %s2407_s17, %s2407_s17, %s2408_s2  }
  0x16   :  { %2388 = dma.done.wait [#allocation3], 128  }
  0x17   :  { %2389 = vsyncadd [#allocation3], 4294967168 }
  0x18   :  { %2390 = dma.done.wait [#allocation6], 8256  }
  0x19   :  { %2391 = vsyncadd [#allocation6], 4294959040 }
  0x1a   :  { %2392 = dma.done.wait [#allocation9], 10240  }
  0x1b   :  { %2393 = vsyncadd [#allocation9], 4294957056 }
  0x1c   :  { %2394 = dma.done.wait [#allocation12], 1024  }
  0x1d   :  { %2395 = vsyncadd [#allocation12], 4294966272  ;;  %v1547_v0 = vld [vmem:[#allocation5 + $0xe0] sm:$0xf]  ;;  %v2073_v1 = vld [vmem:[#allocation5 + $0xec] sm:$0xf0] }
  0x1e   :  { %v1675_v2 = vld [vmem:[#allocation5 + $0x1e0] sm:$0xf]  ;;  %v1548_v3 = vor.u32 %v2073_v1, %v1547_v0  ;;  %v2105_v4 = vld [vmem:[#allocation5 + $0x1ec] sm:$0xf0]  ;;  %v2071_v5 = vld [vmem:[#allocation5 + $0xe4] sm:$0xf] }
  0x1f   :  { %v1549_v6 = vld [vmem:[#allocation5 + $0xf0] sm:$0xf0]  ;;  %v1676_v7 = vor.u32 %v2105_v4, %v1675_v2  ;;  %v2103_v9 = vld [vmem:[#allocation5 + $0x1e4] sm:$0xf]  ;;  %v1531_v11 = vld [vmem:[#allocation5 + $0xc0] sm:$0xf] }
  0x20   :  { %v1552_v8 = vor.u32 %v2071_v5, %v1549_v6  ;;  %v1677_v10 = vld [vmem:[#allocation5 + $0x1f0] sm:$0xf0]  ;;  %525 = vmatpush.bf16.msra.mxu0 %v1548_v3  ;;  %v2069_v13 = vld [vmem:[#allocation5 + $0xcc] sm:$0xf0]  ;;  %v1659_v14 = vld [vmem:[#allocation5 + $0x1c0] sm:$0xf] }
  0x21   :  { %v1680_v12 = vor.u32 %v2103_v9, %v1677_v10  ;;  %v2101_v15 = vld [vmem:[#allocation5 + $0x1cc] sm:$0xf0]  ;;  %538 = vmatpush.bf16.msra.mxu1 %v1676_v7  ;;  %v1532_v16 = vor.u32 %v2069_v13, %v1531_v11  ;;  %v2067_v18 = vld [vmem:[#allocation5 + $0xc4] sm:$0xf]  ;;  %v1533_v19 = vld [vmem:[#allocation5 + $0xd0] sm:$0xf0] }
  0x22   :  { %551 = vmatpush.bf16.msra.mxu2 %v1552_v8  ;;  %v1660_v17 = vor.u32 %v2101_v15, %v1659_v14  ;;  %v2099_v20 = vld [vmem:[#allocation5 + $0x1c4] sm:$0xf]  ;;  %v1536_v21 = vor.u32 %v2067_v18, %v1533_v19  ;;  %v1661_v22 = vld [vmem:[#allocation5 + $0x1d0] sm:$0xf0]  ;;  %v1515_v23 = vld [vmem:[#allocation5 + $0xa0] sm:$0xf] }
  0x23   :  { %564 = vmatpush.bf16.msra.mxu3 %v1680_v12  ;;  %v2065_v24 = vld [vmem:[#allocation5 + $0xac] sm:$0xf0]  ;;  %v1664_v25 = vor.u32 %v2099_v20, %v1661_v22  ;;  %v1643_v26 = vld [vmem:[#allocation5 + $0x1a0] sm:$0xf]  ;;  %v2063_v28 = vld [vmem:[#allocation5 + $0xa4] sm:$0xf] }
  0x24   :  { %v2097_v27 = vld [vmem:[#allocation5 + $0x1ac] sm:$0xf0]  ;;  %526 = vmatpush.bf16.msra.mxu0 %v1532_v16  ;;  %v1516_v29 = vor.u32 %v2065_v24, %v1515_v23  ;;  %v1517_v30 = vld [vmem:[#allocation5 + $0xb0] sm:$0xf0]  ;;  %v2095_v31 = vld [vmem:[#allocation5 + $0x1a4] sm:$0xf] }
  0x25   :  { %v1645_v32 = vld [vmem:[#allocation5 + $0x1b0] sm:$0xf0]  ;;  %539 = vmatpush.bf16.msra.mxu1 %v1660_v17  ;;  %v1644_v33 = vor.u32 %v2097_v27, %v1643_v26  ;;  %v1520_v34 = vor.u32 %v2063_v28, %v1517_v30  ;;  %v1499_v35 = vld [vmem:[#allocation5 + $0x80] sm:$0xf]  ;;  %v2061_v36 = vld [vmem:[#allocation5 + $0x8c] sm:$0xf0] }
  0x26   :  { %552 = vmatpush.bf16.msra.mxu2 %v1536_v21  ;;  %v1627_v37 = vld [vmem:[#allocation5 + $0x180] sm:$0xf]  ;;  %v1648_v38 = vor.u32 %v2095_v31, %v1645_v32  ;;  %v2093_v39 = vld [vmem:[#allocation5 + $0x18c] sm:$0xf0]  ;;  %v2059_v40 = vld [vmem:[#allocation5 + $0x84] sm:$0xf]  ;;  %v1500_v44 = vor.u32 %v2061_v36, %v1499_v35 }
  0x27   :  { %565 = vmatpush.bf16.msra.mxu3 %v1664_v25  ;;  %v1501_v41 = vld [vmem:[#allocation5 + $0x90] sm:$0xf0]  ;;  %v2091_v42 = vld [vmem:[#allocation5 + $0x184] sm:$0xf]  ;;  %v1628_v45 = vor.u32 %v2093_v39, %v1627_v37  ;;  %v1483_v47 = vld [vmem:[#allocation5 + $0x60] sm:$0xf] }
  0x28   :  { %v1629_v43 = vld [vmem:[#allocation5 + $0x190] sm:$0xf0]  ;;  %527 = vmatpush.bf16.msra.mxu0 %v1516_v29  ;;  %v1504_v46 = vor.u32 %v2059_v40, %v1501_v41  ;;  %v2057_v48 = vld [vmem:[#allocation5 + $0x6c] sm:$0xf0]  ;;  %v1611_v49 = vld [vmem:[#allocation5 + $0x160] sm:$0xf] }
  0x29   :  { %540 = vmatpush.bf16.msra.mxu1 %v1644_v33  ;;  %v1632_v50 = vor.u32 %v2091_v42, %v1629_v43  ;;  %v2089_v51 = vld [vmem:[#allocation5 + $0x16c] sm:$0xf0]  ;;  %v2055_v52 = vld [vmem:[#allocation5 + $0x64] sm:$0xf]  ;;  %v1485_v53 = vld [vmem:[#allocation5 + $0x70] sm:$0xf0]  ;;  %v1484_v56 = vor.u32 %v2057_v48, %v1483_v47 }
  0x2a   :  { %553 = vmatpush.bf16.msra.mxu2 %v1520_v34  ;;  %v2087_v54 = vld [vmem:[#allocation5 + $0x164] sm:$0xf]  ;;  %v1613_v55 = vld [vmem:[#allocation5 + $0x170] sm:$0xf0]  ;;  %v1612_v57 = vor.u32 %v2089_v51, %v1611_v49  ;;  %v1488_v58 = vor.u32 %v2055_v52, %v1485_v53  ;;  %v1467_v59 = vld [vmem:[#allocation5 + $0x40] sm:$0xf] }
  0x2b   :  { %566 = vmatpush.bf16.msra.mxu3 %v1648_v38  ;;  %v2053_v60 = vld [vmem:[#allocation5 + $0x4c] sm:$0xf0]  ;;  %v1595_v61 = vld [vmem:[#allocation5 + $0x140] sm:$0xf]  ;;  %v1616_v62 = vor.u32 %v2087_v54, %v1613_v55  ;;  %v2051_v0 = vld [vmem:[#allocation5 + $0x44] sm:$0xf] }
  0x2c   :  { %528 = vmatpush.bf16.msra.mxu0 %v1500_v44  ;;  %v2085_v63 = vld [vmem:[#allocation5 + $0x14c] sm:$0xf0]  ;;  %v1469_v1 = vld [vmem:[#allocation5 + $0x50] sm:$0xf0]  ;;  %v2083_v2 = vld [vmem:[#allocation5 + $0x144] sm:$0xf]  ;;  %v1468_v4 = vor.u32 %v2053_v60, %v1467_v59 }
  0x2d   :  { %541 = vmatpush.bf16.msra.mxu1 %v1628_v45  ;;  %v1597_v3 = vld [vmem:[#allocation5 + $0x150] sm:$0xf0]  ;;  %v1596_v5 = vor.u32 %v2085_v63, %v1595_v61  ;;  %v1472_v6 = vor.u32 %v2051_v0, %v1469_v1  ;;  %v1451_v7 = vld [vmem:[#allocation5 + $0x20] sm:$0xf]  ;;  %v2049_v8 = vld [vmem:[#allocation5 + $0x2c] sm:$0xf0] }
  0x2e   :  { %554 = vmatpush.bf16.msra.mxu2 %v1504_v46  ;;  %v1579_v9 = vld [vmem:[#allocation5 + $0x120] sm:$0xf]  ;;  %v1600_v10 = vor.u32 %v2083_v2, %v1597_v3  ;;  %v2081_v11 = vld [vmem:[#allocation5 + $0x12c] sm:$0xf0]  ;;  %v2047_v12 = vld [vmem:[#allocation5 + $0x24] sm:$0xf]  ;;  %v1452_v16 = vor.u32 %v2049_v8, %v1451_v7 }
  0x2f   :  { %567 = vmatpush.bf16.msra.mxu3 %v1632_v50  ;;  %v1453_v13 = vld [vmem:[#allocation5 + $0x30] sm:$0xf0]  ;;  %v2079_v14 = vld [vmem:[#allocation5 + $0x124] sm:$0xf]  ;;  %v1435_v17 = vld [vmem:[#allocation5] sm:$0xf]  ;;  %v1580_v20 = vor.u32 %v2081_v11, %v1579_v9 }
  0x30   :  { %529 = vmatpush.bf16.msra.mxu0 %v1484_v56  ;;  %v1581_v15 = vld [vmem:[#allocation5 + $0x130] sm:$0xf0]  ;;  %v2045_v18 = vld [vmem:[#allocation5 + $0xc] sm:$0xf0]  ;;  %v1563_v19 = vld [vmem:[#allocation5 + $0x100] sm:$0xf]  ;;  %v1456_v21 = vor.u32 %v2047_v12, %v1453_v13 }
  0x31   :  { %542 = vmatpush.bf16.msra.mxu1 %v1612_v57  ;;  %v2077_v22 = vld [vmem:[#allocation5 + $0x10c] sm:$0xf0]  ;;  %v2043_v23 = vld [vmem:[#allocation5 + $0x4] sm:$0xf]  ;;  %v123_v24 = vld [vmem:[#allocation2] sm:$0xff]  ;;  %v1584_v25 = vor.u32 %v2079_v14, %v1581_v15  ;;  %v1436_v32 = vor.u32 %v2045_v18, %v1435_v17  ;;  %s2410_s1 = smov [#allocation13]  }
  0x32   :  { %555 = vmatpush.bf16.msra.mxu2 %v1488_v58  ;;  %v1437_v26 = vld [vmem:[#allocation5 + $0x10] sm:$0xf0]  ;;  %v2075_v27 = vld [vmem:[#allocation5 + $0x104] sm:$0xf]  ;;  %v1555_v29 = vld [vmem:[#allocation5 + $0xe8] sm:$0xf]  ;;  %v199_v36 = vunpack.c.l.b16 %v123_v24  ;;  %v1564_v37 = vor.u32 %v2077_v22, %v1563_v19  ;;  %v200_v41 = vunpack.c.h.b16 %v123_v24 }
  0x33   :  { %568 = vmatpush.bf16.msra.mxu3 %v1616_v62  ;;  %v1565_v28 = vld [vmem:[#allocation5 + $0x110] sm:$0xf0]  ;;  %v2074_v30 = vld [vmem:[#allocation5 + $0xf4] sm:$0xf0]  ;;  %v1683_v31 = vld [vmem:[#allocation5 + $0x1e8] sm:$0xf]  ;;  %v1440_v38 = vor.u32 %v2043_v23, %v1437_v26 }
  0x34   :  { %530 = vmatpush.bf16.msra.mxu0 %v1468_v4  ;;  %v2106_v33 = vld [vmem:[#allocation5 + $0x1f4] sm:$0xf0]  ;;  %v2072_v34 = vld [vmem:[#allocation5 + $0xec] sm:$0xf]  ;;  %v1557_v35 = vld [vmem:[#allocation5 + $0xf8] sm:$0xf0]  ;;  %v1568_v42 = vor.u32 %v2075_v27, %v1565_v28  ;;  %v1556_v43 = vor.u32 %v2074_v30, %v1555_v29  ;;  %v2479_v50 = vpack.c.b16 %v199_v36, %v199_v36  ;;  %v2481_v54 = vpack.c.b16 %v200_v41, %v200_v41 }
  0x35   :  { %543 = vmatpush.bf16.msra.mxu1 %v1596_v5  ;;  %v2104_v39 = vld [vmem:[#allocation5 + $0x1ec] sm:$0xf]  ;;  %v1685_v40 = vld [vmem:[#allocation5 + $0x1f8] sm:$0xf0]  ;;  %v1684_v44 = vor.u32 %v2106_v33, %v1683_v31  ;;  %v1560_v45 = vor.u32 %v2072_v34, %v1557_v35  ;;  %v1539_v46 = vld [vmem:[#allocation5 + $0xc8] sm:$0xf] }
  0x36   :  { %556 = vmatpush.bf16.msra.mxu2 %v1472_v6  ;;  %v2070_v47 = vld [vmem:[#allocation5 + $0xd4] sm:$0xf0]  ;;  %v1667_v48 = vld [vmem:[#allocation5 + $0x1c8] sm:$0xf]  ;;  %v1688_v49 = vor.u32 %v2104_v39, %v1685_v40  ;;  %v2068_v52 = vld [vmem:[#allocation5 + $0xcc] sm:$0xf] }
  0x37   :  { %569 = vmatpush.bf16.msra.mxu3 %v1600_v10  ;;  %v2102_v51 = vld [vmem:[#allocation5 + $0x1d4] sm:$0xf0]  ;;  %v1541_v53 = vld [vmem:[#allocation5 + $0xd8] sm:$0xf0]  ;;  %v2100_v55 = vld [vmem:[#allocation5 + $0x1cc] sm:$0xf]  ;;  %v1540_v57 = vor.u32 %v2070_v47, %v1539_v46 }
  0x38   :  { %531 = vmatpush.bf16.msra.mxu0 %v1452_v16  ;;  %v1669_v56 = vld [vmem:[#allocation5 + $0x1d8] sm:$0xf0]  ;;  %v1668_v58 = vor.u32 %v2102_v51, %v1667_v48  ;;  %v1544_v59 = vor.u32 %v2068_v52, %v1541_v53  ;;  %v1523_v60 = vld [vmem:[#allocation5 + $0xa8] sm:$0xf]  ;;  %v2066_v61 = vld [vmem:[#allocation5 + $0xb4] sm:$0xf0] }
  0x39   :  { %544 = vmatpush.bf16.msra.mxu1 %v1580_v20  ;;  %v1651_v62 = vld [vmem:[#allocation5 + $0x1a8] sm:$0xf]  ;;  %v1672_v63 = vor.u32 %v2100_v55, %v1669_v56  ;;  %v2098_v0 = vld [vmem:[#allocation5 + $0x1b4] sm:$0xf0]  ;;  %v2064_v1 = vld [vmem:[#allocation5 + $0xac] sm:$0xf]  ;;  %v1524_v5 = vor.u32 %v2066_v61, %v1523_v60 }
  0x3a   :  { %557 = vmatpush.bf16.msra.mxu2 %v1456_v21  ;;  %v1525_v2 = vld [vmem:[#allocation5 + $0xb8] sm:$0xf0]  ;;  %v2096_v3 = vld [vmem:[#allocation5 + $0x1ac] sm:$0xf]  ;;  %v1652_v6 = vor.u32 %v2098_v0, %v1651_v62  ;;  %v1507_v8 = vld [vmem:[#allocation5 + $0x88] sm:$0xf] }
  0x3b   :  { %570 = vmatpush.bf16.msra.mxu3 %v1584_v25  ;;  %v1653_v4 = vld [vmem:[#allocation5 + $0x1b8] sm:$0xf0]  ;;  %v1528_v7 = vor.u32 %v2064_v1, %v1525_v2  ;;  %v2062_v9 = vld [vmem:[#allocation5 + $0x94] sm:$0xf0]  ;;  %v1635_v10 = vld [vmem:[#allocation5 + $0x188] sm:$0xf] }
  0x3c   :  { %532 = vmatpush.bf16.msra.mxu0 %v1436_v32  ;;  %v1656_v11 = vor.u32 %v2096_v3, %v1653_v4  ;;  %v2094_v12 = vld [vmem:[#allocation5 + $0x194] sm:$0xf0]  ;;  %v2060_v13 = vld [vmem:[#allocation5 + $0x8c] sm:$0xf]  ;;  %v1509_v14 = vld [vmem:[#allocation5 + $0x98] sm:$0xf0]  ;;  %v1508_v17 = vor.u32 %v2062_v9, %v1507_v8 }
  0x3d   :  { %545 = vmatpush.bf16.msra.mxu1 %v1564_v37  ;;  %v2092_v15 = vld [vmem:[#allocation5 + $0x18c] sm:$0xf]  ;;  %v1637_v16 = vld [vmem:[#allocation5 + $0x198] sm:$0xf0]  ;;  %v1636_v18 = vor.u32 %v2094_v12, %v1635_v10  ;;  %v1512_v19 = vor.u32 %v2060_v13, %v1509_v14  ;;  %v1491_v20 = vld [vmem:[#allocation5 + $0x68] sm:$0xf] }
  0x3e   :  { %558 = vmatpush.bf16.msra.mxu2 %v1440_v38  ;;  %v2058_v21 = vld [vmem:[#allocation5 + $0x74] sm:$0xf0]  ;;  %v1619_v22 = vld [vmem:[#allocation5 + $0x168] sm:$0xf]  ;;  %v1640_v23 = vor.u32 %v2092_v15, %v1637_v16  ;;  %v2056_v25 = vld [vmem:[#allocation5 + $0x6c] sm:$0xf] }
  0x3f   :  { %571 = vmatpush.bf16.msra.mxu3 %v1568_v42  ;;  %533 = vmatmul.bf16.vlgmr.msra.gmra.mxu0 %v2479_v50  ;;  %v2090_v24 = vld [vmem:[#allocation5 + $0x174] sm:$0xf0]  ;;  %v1493_v26 = vld [vmem:[#allocation5 + $0x78] sm:$0xf0]  ;;  %v2088_v27 = vld [vmem:[#allocation5 + $0x16c] sm:$0xf]  ;;  %v1492_v29 = vor.u32 %v2058_v21, %v1491_v20 }
  0x40   :  { %577 = vmatpush.bf16.msrb.mxu0 %v1556_v43  ;;  %546 = vmatmul.bf16.vlgmr.msra.gmra.mxu1 %v2481_v54  ;;  %v1621_v28 = vld [vmem:[#allocation5 + $0x178] sm:$0xf0]  ;;  %v1620_v30 = vor.u32 %v2090_v24, %v1619_v22  ;;  %v1496_v31 = vor.u32 %v2056_v25, %v1493_v26  ;;  %v1475_v32 = vld [vmem:[#allocation5 + $0x48] sm:$0xf]  ;;  %v2054_v33 = vld [vmem:[#allocation5 + $0x54] sm:$0xf0] }
  0x41   :  { %590 = vmatpush.bf16.msrb.mxu1 %v1684_v44  ;;  %559 = vmatmul.bf16.vlgmr.msra.gmra.mxu2 %v2479_v50  ;;  %v1603_v34 = vld [vmem:[#allocation5 + $0x148] sm:$0xf]  ;;  %v1624_v35 = vor.u32 %v2088_v27, %v1621_v28  ;;  %v2086_v36 = vld [vmem:[#allocation5 + $0x154] sm:$0xf0]  ;;  %v2052_v37 = vld [vmem:[#allocation5 + $0x4c] sm:$0xf]  ;;  %v1476_v41 = vor.u32 %v2054_v33, %v1475_v32 }
  0x42   :  { %603 = vmatpush.bf16.msrb.mxu2 %v1560_v45  ;;  %572 = vmatmul.bf16.vlgmr.msra.gmra.mxu3 %v2481_v54  ;;  %v1477_v38 = vld [vmem:[#allocation5 + $0x58] sm:$0xf0]  ;;  %v2084_v39 = vld [vmem:[#allocation5 + $0x14c] sm:$0xf]  ;;  %v1459_v42 = vld [vmem:[#allocation5 + $0x28] sm:$0xf]  ;;  %v1604_v43 = vor.u32 %v2086_v36, %v1603_v34 }
  0x43   :  { %616 = vmatpush.bf16.msrb.mxu3 %v1688_v49  ;;  %v1605_v40 = vld [vmem:[#allocation5 + $0x158] sm:$0xf0]  ;;  %v1480_v44 = vor.u32 %v2052_v37, %v1477_v38  ;;  %v2050_v45 = vld [vmem:[#allocation5 + $0x34] sm:$0xf0]  ;;  %v1587_v46 = vld [vmem:[#allocation5 + $0x128] sm:$0xf] }
  0x44   :  { %578 = vmatpush.bf16.msrb.mxu0 %v1540_v57  ;;  %v1608_v47 = vor.u32 %v2084_v39, %v1605_v40  ;;  %v2082_v48 = vld [vmem:[#allocation5 + $0x134] sm:$0xf0]  ;;  %v2048_v49 = vld [vmem:[#allocation5 + $0x2c] sm:$0xf]  ;;  %v1461_v51 = vld [vmem:[#allocation5 + $0x38] sm:$0xf0]  ;;  %v1460_v55 = vor.u32 %v2050_v45, %v1459_v42 }
  0x45   :  { %591 = vmatpush.bf16.msrb.mxu1 %v1668_v58  ;;  %v2080_v52 = vld [vmem:[#allocation5 + $0x12c] sm:$0xf]  ;;  %v1589_v53 = vld [vmem:[#allocation5 + $0x138] sm:$0xf0]  ;;  %v1443_v56 = vld [vmem:[#allocation5 + $0x8] sm:$0xf]  ;;  %v1588_v57 = vor.u32 %v2082_v48, %v1587_v46  ;;  %v1464_v58 = vor.u32 %v2048_v49, %v1461_v51 }
  0x46   :  { %604 = vmatpush.bf16.msrb.mxu2 %v1544_v59  ;;  %v2046_v59 = vld [vmem:[#allocation5 + $0x14] sm:$0xf0]  ;;  %v1571_v60 = vld [vmem:[#allocation5 + $0x108] sm:$0xf]  ;;  %v1592_v62 = vor.u32 %v2080_v52, %v1589_v53  ;;  %v1445_v0 = vld [vmem:[#allocation5 + $0x18] sm:$0xf0] }
  0x47   :  { %617 = vmatpush.bf16.msrb.mxu3 %v1672_v63  ;;  %v2078_v61 = vld [vmem:[#allocation5 + $0x114] sm:$0xf0]  ;;  %v2044_v63 = vld [vmem:[#allocation5 + $0xc] sm:$0xf]  ;;  %v1573_v2 = vld [vmem:[#allocation5 + $0x118] sm:$0xf0] }
  0x48   :  { %579 = vmatpush.bf16.msrb.mxu0 %v1524_v5  ;;  %v2076_v1 = vld [vmem:[#allocation5 + $0x10c] sm:$0xf]  ;;  %v1747_v3 = vld [vmem:[#allocation8 + $0x70] sm:$0xf]  ;;  %v2122_v4 = vld [vmem:[#allocation8 + $0x74] sm:$0xf0]  ;;  %v1444_v5 = vor.u32 %v2046_v59, %v1443_v56  ;;  %v1572_v8 = vor.u32 %v2078_v61, %v1571_v60  ;;  %v1448_v9 = vor.u32 %v2044_v63, %v1445_v0 }
  0x49   :  { %592 = vmatpush.bf16.msrb.mxu1 %v1652_v6  ;;  %v1811_v6 = vld [vmem:[#allocation8 + $0xf0] sm:$0xf]  ;;  %v1576_v10 = vor.u32 %v2076_v1, %v1573_v2  ;;  %v2154_v13 = vld [vmem:[#allocation8 + $0x174] sm:$0xf0]  ;;  %v1739_v14 = vld [vmem:[#allocation8 + $0x60] sm:$0xf] }
  0x4a   :  { %605 = vmatpush.bf16.msrb.mxu2 %v1528_v7  ;;  %v2138_v7 = vld [vmem:[#allocation8 + $0xf4] sm:$0xf0]  ;;  %v1875_v12 = vld [vmem:[#allocation8 + $0x170] sm:$0xf]  ;;  %v2120_v15 = vld [vmem:[#allocation8 + $0x64] sm:$0xf0] }
  0x4b   :  { %618 = vmatpush.bf16.msrb.mxu3 %v1656_v11  ;;  %v1748_v11 = vor.u32 %v2122_v4, %v1747_v3  ;;  %v1812_v16 = vor.u32 %v2138_v7, %v1811_v6  ;;  %v1740_v20 = vor.u32 %v2120_v15, %v1739_v14  ;;  %v1867_v21 = vld [vmem:[#allocation8 + $0x160] sm:$0xf]  ;;  %v2152_v22 = vld [vmem:[#allocation8 + $0x164] sm:$0xf0]  ;;  %v2118_v24 = vld [vmem:[#allocation8 + $0x54] sm:$0xf0] }
  0x4c   :  { %580 = vmatpush.bf16.msrb.mxu0 %v1508_v17  ;;  %v1803_v17 = vld [vmem:[#allocation8 + $0xe0] sm:$0xf]  ;;  %v1795_v26 = vld [vmem:[#allocation8 + $0xd0] sm:$0xf]  ;;  %v2134_v27 = vld [vmem:[#allocation8 + $0xd4] sm:$0xf0]  ;;  %v1868_v28 = vor.u32 %v2152_v22, %v1867_v21 }
  0x4d   :  { %593 = vmatpush.bf16.msrb.mxu1 %v1636_v18  ;;  %v2136_v18 = vld [vmem:[#allocation8 + $0xe4] sm:$0xf0]  ;;  %v1796_v32 = vor.u32 %v2134_v27, %v1795_v26  ;;  %v1787_v33 = vld [vmem:[#allocation8 + $0xc0] sm:$0xf]  ;;  %v1715_v36 = vld [vmem:[#allocation8 + $0x30] sm:$0xf] }
  0x4e   :  { %606 = vmatpush.bf16.msrb.mxu2 %v1512_v19  ;;  %v1876_v19 = vor.u32 %v2154_v13, %v1875_v12  ;;  %v1804_v25 = vor.u32 %v2136_v18, %v1803_v17  ;;  %v2132_v34 = vld [vmem:[#allocation8 + $0xc4] sm:$0xf0]  ;;  %v1779_v38 = vld [vmem:[#allocation8 + $0xb0] sm:$0xf]  ;;  %v2130_v39 = vld [vmem:[#allocation8 + $0xb4] sm:$0xf0] }
  0x4f   :  { %619 = vmatpush.bf16.msrb.mxu3 %v1640_v23  ;;  %v1731_v23 = vld [vmem:[#allocation8 + $0x50] sm:$0xf]  ;;  %v1788_v37 = vor.u32 %v2132_v34, %v1787_v33  ;;  %v1707_v40 = vld [vmem:[#allocation8 + $0x20] sm:$0xf]  ;;  %v1780_v42 = vor.u32 %v2130_v39, %v1779_v38  ;;  %v2126_v51 = vld [vmem:[#allocation8 + $0x94] sm:$0xf0] }
  0x50   :  { %581 = vmatpush.bf16.msrb.mxu0 %v1492_v29  ;;  %v1732_v29 = vor.u32 %v2118_v24, %v1731_v23  ;;  %v1699_v46 = vld [vmem:[#allocation8 + $0x10] sm:$0xf]  ;;  %v1691_v53 = vld [vmem:[#allocation8] sm:$0xf]  ;;  %v2121_v56 = vld [vmem:[#allocation8 + $0x74] sm:$0xf] }
  0x51   :  { %594 = vmatpush.bf16.msrb.mxu1 %v1620_v30  ;;  %v1723_v30 = vld [vmem:[#allocation8 + $0x40] sm:$0xf]  ;;  %v1763_v49 = vld [vmem:[#allocation8 + $0x90] sm:$0xf]  ;;  %v2124_v60 = vld [vmem:[#allocation8 + $0x84] sm:$0xf0] }
  0x52   :  { %607 = vmatpush.bf16.msrb.mxu2 %v1496_v31  ;;  %v2116_v31 = vld [vmem:[#allocation8 + $0x44] sm:$0xf0]  ;;  %v1755_v59 = vld [vmem:[#allocation8 + $0x80] sm:$0xf]  ;;  %v2119_v0 = vld [vmem:[#allocation8 + $0x64] sm:$0xf] }
  0x53   :  { %620 = vmatpush.bf16.msrb.mxu3 %v1624_v35  ;;  %v1724_v35 = vor.u32 %v2116_v31, %v1723_v30  ;;  %v1756_v63 = vor.u32 %v2124_v60, %v1755_v59  ;;  %v1741_v1 = vld [vmem:[#allocation8 + $0x68] sm:$0xf0]  ;;  %v1939_v3 = vld [vmem:[#allocation8 + $0x1f0] sm:$0xf]  ;;  %v2170_v4 = vld [vmem:[#allocation8 + $0x1f4] sm:$0xf0] }
  0x54   :  { %582 = vmatpush.bf16.msrb.mxu0 %v1476_v41  ;;  %v2112_v41 = vld [vmem:[#allocation8 + $0x24] sm:$0xf0]  ;;  %v1744_v2 = vor.u32 %v2119_v0, %v1741_v1  ;;  %v1940_v6 = vor.u32 %v2170_v4, %v1939_v3  ;;  %v1813_v7 = vld [vmem:[#allocation8 + $0xf8] sm:$0xf0]  ;;  %v1931_v15 = vld [vmem:[#allocation8 + $0x1e0] sm:$0xf] }
  0x55   :  { %595 = vmatpush.bf16.msrb.mxu1 %v1604_v43  ;;  %v1771_v43 = vld [vmem:[#allocation8 + $0xa0] sm:$0xf]  ;;  %v1708_v45 = vor.u32 %v2112_v41, %v1707_v40  ;;  %v1733_v13 = vld [vmem:[#allocation8 + $0x58] sm:$0xf0]  ;;  %v2135_v17 = vld [vmem:[#allocation8 + $0xe4] sm:$0xf] }
  0x56   :  { %608 = vmatpush.bf16.msrb.mxu2 %v1480_v44  ;;  %v2128_v44 = vld [vmem:[#allocation8 + $0xa4] sm:$0xf0]  ;;  %v1851_v21 = vld [vmem:[#allocation8 + $0x140] sm:$0xf]  ;;  %v2115_v23 = vld [vmem:[#allocation8 + $0x44] sm:$0xf] }
  0x57   :  { %621 = vmatpush.bf16.msrb.mxu3 %v1608_v47  ;;  %v2110_v47 = vld [vmem:[#allocation8 + $0x14] sm:$0xf0]  ;;  %v1772_v48 = vor.u32 %v2128_v44, %v1771_v43  ;;  %v2148_v22 = vld [vmem:[#allocation8 + $0x144] sm:$0xf0]  ;;  %v1923_v27 = vld [vmem:[#allocation8 + $0x1d0] sm:$0xf] }
  0x58   :  { %583 = vmatpush.bf16.msrb.mxu0 %v1460_v55  ;;  %v1700_v52 = vor.u32 %v2110_v47, %v1699_v46  ;;  %v2108_v55 = vld [vmem:[#allocation8 + $0x4] sm:$0xf0]  ;;  %v1852_v24 = vor.u32 %v2148_v22, %v1851_v21  ;;  %v2133_v30 = vld [vmem:[#allocation8 + $0xd4] sm:$0xf]  ;;  %v1797_v31 = vld [vmem:[#allocation8 + $0xd8] sm:$0xf0] }
  0x59   :  { %596 = vmatpush.bf16.msrb.mxu1 %v1588_v57  ;;  %v1764_v57 = vor.u32 %v2126_v51, %v1763_v49  ;;  %v1692_v61 = vor.u32 %v2108_v55, %v1691_v53  ;;  %v1843_v33 = vld [vmem:[#allocation8 + $0x130] sm:$0xf]  ;;  %v2146_v34 = vld [vmem:[#allocation8 + $0x134] sm:$0xf0]  ;;  %v1915_v38 = vld [vmem:[#allocation8 + $0x1c0] sm:$0xf] }
  0x5a   :  { %609 = vmatpush.bf16.msrb.mxu2 %v1464_v58  ;;  %v1749_v58 = vld [vmem:[#allocation8 + $0x78] sm:$0xf0]  ;;  %v2164_v39 = vld [vmem:[#allocation8 + $0x1c4] sm:$0xf0]  ;;  %v1789_v41 = vld [vmem:[#allocation8 + $0xc8] sm:$0xf0] }
  0x5b   :  { %622 = vmatpush.bf16.msrb.mxu3 %v1592_v62  ;;  %v1752_v62 = vor.u32 %v2121_v56, %v1749_v58  ;;  %v1916_v40 = vor.u32 %v2164_v39, %v1915_v38  ;;  %v1835_v43 = vld [vmem:[#allocation8 + $0x120] sm:$0xf]  ;;  %v2144_v44 = vld [vmem:[#allocation8 + $0x124] sm:$0xf0]  ;;  %v1709_v47 = vld [vmem:[#allocation8 + $0x28] sm:$0xf0] }
  0x5c   :  { %584 = vmatpush.bf16.msrb.mxu0 %v1444_v5  ;;  %v2137_v5 = vld [vmem:[#allocation8 + $0xf4] sm:$0xf]  ;;  %v1836_v46 = vor.u32 %v2144_v44, %v1835_v43  ;;  %v1907_v49 = vld [vmem:[#allocation8 + $0x1b0] sm:$0xf]  ;;  %v2162_v51 = vld [vmem:[#allocation8 + $0x1b4] sm:$0xf0] }
  0x5d   :  { %597 = vmatpush.bf16.msrb.mxu1 %v1572_v8  ;;  %v1816_v8 = vor.u32 %v2137_v5, %v1813_v7  ;;  %v1908_v53 = vor.u32 %v2162_v51, %v1907_v49  ;;  %v1781_v55 = vld [vmem:[#allocation8 + $0xb8] sm:$0xf0]  ;;  %v1827_v56 = vld [vmem:[#allocation8 + $0x110] sm:$0xf]  ;;  %v2109_v60 = vld [vmem:[#allocation8 + $0x14] sm:$0xf] }
  0x5e   :  { %610 = vmatpush.bf16.msrb.mxu2 %v1448_v9  ;;  %v1859_v9 = vld [vmem:[#allocation8 + $0x150] sm:$0xf]  ;;  %v2160_v0 = vld [vmem:[#allocation8 + $0x1a4] sm:$0xf0]  ;;  %v2127_v1 = vld [vmem:[#allocation8 + $0xa4] sm:$0xf] }
  0x5f   :  { %623 = vmatpush.bf16.msrb.mxu3 %v1576_v10  ;;  %585 = vmatmul.bf16.vlgmr.msrb.gmra.mxu0 %v2479_v50  ;;  %v2150_v10 = vld [vmem:[#allocation8 + $0x154] sm:$0xf0]  ;;  %v1819_v5 = vld [vmem:[#allocation8 + $0x100] sm:$0xf]  ;;  %v2107_v7 = vld [vmem:[#allocation8 + $0x4] sm:$0xf] }
  0x60   :  { %1027 = vmatpush.bf16.msra.mxu0 %v1748_v11  ;;  %598 = vmatmul.bf16.vlgmr.msrb.gmra.mxu1 %v2481_v54  ;;  %v2117_v11 = vld [vmem:[#allocation8 + $0x54] sm:$0xf]  ;;  %v1860_v12 = vor.u32 %v2150_v10, %v1859_v9  ;;  %v1693_v9 = vld [vmem:[#allocation8 + $0x8] sm:$0xf0]  ;;  %v2151_v21 = vld [vmem:[#allocation8 + $0x164] sm:$0xf] }
  0x61   :  { %1040 = vmatpush.bf16.msra.mxu1 %v1812_v16  ;;  %611 = vmatmul.bf16.vlgmr.msrb.gmra.mxu2 %v2479_v50  ;;  %v2114_v50 = vld [vmem:[#allocation8 + $0x34] sm:$0xf0]  ;;  %v1736_v14 = vor.u32 %v2117_v11, %v1733_v13  ;;  %v2168_v16 = vld [vmem:[#allocation8 + $0x1e4] sm:$0xf0]  ;;  %v2153_v10 = vld [vmem:[#allocation8 + $0x174] sm:$0xf] }
  0x62   :  { %624 = vmatmul.bf16.vlgmr.msrb.gmra.mxu3 %v2481_v54  ;;  %1053 = vmatpush.bf16.msra.mxu2 %v1876_v19  ;;  %v1716_v54 = vor.u32 %v2114_v50, %v1715_v36  ;;  %v1932_v18 = vor.u32 %v2168_v16, %v1931_v15  ;;  %v1805_v19 = vld [vmem:[#allocation8 + $0xe8] sm:$0xf0]  ;;  %v1844_v36 = vor.u32 %v2146_v34, %v1843_v33  ;;  %v1717_v50 = vld [vmem:[#allocation8 + $0x38] sm:$0xf0]  ;;  %v2158_v15 = vld [vmem:[#allocation8 + $0x194] sm:$0xf0] }
  0x63   :  { %1066 = vmatpush.bf16.msra.mxu3 %v1940_v6  ;;  %v2140_v6 = vld [vmem:[#allocation8 + $0x104] sm:$0xf0]  ;;  %v1877_v11 = vld [vmem:[#allocation8 + $0x178] sm:$0xf0]  ;;  %v2125_v16 = vld [vmem:[#allocation8 + $0x94] sm:$0xf] }
  0x64   :  { %1028 = vmatpush.bf16.msra.mxu0 %v1740_v20  ;;  %v1808_v20 = vor.u32 %v2135_v17, %v1805_v19  ;;  %v1880_v13 = vor.u32 %v2153_v10, %v1877_v11  ;;  %v1869_v22 = vld [vmem:[#allocation8 + $0x168] sm:$0xf0]  ;;  %v2149_v34 = vld [vmem:[#allocation8 + $0x154] sm:$0xf]  ;;  %v2159_v10 = vld [vmem:[#allocation8 + $0x1a4] sm:$0xf] }
  0x65   :  { %1041 = vmatpush.bf16.msra.mxu1 %v1804_v25  ;;  %v1725_v25 = vld [vmem:[#allocation8 + $0x48] sm:$0xf0]  ;;  %v2145_v51 = vld [vmem:[#allocation8 + $0x134] sm:$0xf]  ;;  %s1418_s23 = sshll.u32 %s2410_s1, 4  ;;  %s1420_s26 = sshll.u32 %s2518_s9, 4  ;;  %s1419_s23 = int_to_ptr.vmem [resolvable:$true] %s1418_s23  ;;  %s1421_s26 = int_to_ptr.hbm [resolvable:$true] %s1420_s26 }
  0x66   :  { %1054 = vmatpush.bf16.msra.mxu2 %v1868_v28  ;;  %v1728_v26 = vor.u32 %v2115_v23, %v1725_v25  ;;  %v2166_v28 = vld [vmem:[#allocation8 + $0x1d4] sm:$0xf0]  ;;  %v1883_v23 = vld [vmem:[#allocation8 + $0x180] sm:$0xf]  ;;  %v2156_v25 = vld [vmem:[#allocation8 + $0x184] sm:$0xf0] }
  0x67   :  { %1067 = vmatpush.bf16.msra.mxu3 %v1932_v18  ;;  %v1765_v18 = vld [vmem:[#allocation8 + $0x98] sm:$0xf0]  ;;  %v1933_v38 = vld [vmem:[#allocation8 + $0x1e8] sm:$0xf0] }
  0x68   :  { %1029 = vmatpush.bf16.msra.mxu0 %v1732_v29  ;;  %v1924_v29 = vor.u32 %v2166_v28, %v1923_v27  ;;  %v1768_v19 = vor.u32 %v2125_v16, %v1765_v18  ;;  %v1757_v27 = vld [vmem:[#allocation8 + $0x88] sm:$0xf0]  ;;  %v1884_v28 = vor.u32 %v2156_v25, %v1883_v23 }
  0x69   :  { %1042 = vmatpush.bf16.msra.mxu1 %v1796_v32  ;;  %v1800_v32 = vor.u32 %v2133_v30, %v1797_v31  ;;  %v2169_v30 = vld [vmem:[#allocation8 + $0x1f4] sm:$0xf]  ;;  %v1941_v31 = vld [vmem:[#allocation8 + $0x1f8] sm:$0xf0]  ;;  %v1885_v25 = vld [vmem:[#allocation8 + $0x188] sm:$0xf0] }
  0x6a   :  { %1055 = vmatpush.bf16.msra.mxu2 %v1860_v12  ;;  %v1696_v12 = vor.u32 %v2107_v7, %v1693_v9  ;;  %v1944_v33 = vor.u32 %v2169_v30, %v1941_v31  ;;  %v1829_v9 = vld [vmem:[#allocation8 + $0x118] sm:$0xf0] }
  0x6b   :  { %1068 = vmatpush.bf16.msra.mxu3 %v1924_v29 }
  0x6c   :  { %1030 = vmatpush.bf16.msra.mxu0 %v1724_v35  ;;  %v2113_v35 = vld [vmem:[#allocation8 + $0x34] sm:$0xf] }
  0x6d   :  { %1043 = vmatpush.bf16.msra.mxu1 %v1788_v37  ;;  %v1720_v37 = vor.u32 %v2113_v35, %v1717_v50  ;;  %v1861_v35 = vld [vmem:[#allocation8 + $0x158] sm:$0xf0] }
  0x6e   :  { %1056 = vmatpush.bf16.msra.mxu2 %v1852_v24  ;;  %v1872_v24 = vor.u32 %v2151_v21, %v1869_v22  ;;  %v1893_v21 = vld [vmem:[#allocation8 + $0x198] sm:$0xf0] }
  0x6f   :  { %1069 = vmatpush.bf16.msra.mxu3 %v1916_v40 }
  0x70   :  { %1031 = vmatpush.bf16.msra.mxu0 %v1716_v54  ;;  %v2131_v54 = vld [vmem:[#allocation8 + $0xc4] sm:$0xf] }
  0x71   :  { %1044 = vmatpush.bf16.msra.mxu1 %v1780_v42  ;;  %v1792_v42 = vor.u32 %v2131_v54, %v1789_v41  ;;  %v2147_v41 = vld [vmem:[#allocation8 + $0x144] sm:$0xf] }
  0x72   :  { %1057 = vmatpush.bf16.msra.mxu2 %v1844_v36  ;;  %v1864_v36 = vor.u32 %v2149_v34, %v1861_v35 }
  0x73   :  { %1070 = vmatpush.bf16.msra.mxu3 %v1908_v53 }
  0x74   :  { %1032 = vmatpush.bf16.msra.mxu0 %v1708_v45  ;;  %v2111_v45 = vld [vmem:[#allocation8 + $0x24] sm:$0xf] }
  0x75   :  { %1045 = vmatpush.bf16.msra.mxu1 %v1772_v48  ;;  %v1712_v48 = vor.u32 %v2111_v45, %v1709_v47  ;;  %v1925_v47 = vld [vmem:[#allocation8 + $0x1d8] sm:$0xf0] }
  0x76   :  { %1058 = vmatpush.bf16.msra.mxu2 %v1836_v46  ;;  %v2165_v46 = vld [vmem:[#allocation8 + $0x1d4] sm:$0xf] }
  0x77   :  { %v1928_v49 = vor.u32 %v2165_v46, %v1925_v47  ;;  %v2177_v47 = vld [vmem:[#allocation10 + $0x30] sm:$0xff] }
  0x78   :  { %1033 = vmatpush.bf16.msra.mxu0 %v1700_v52  ;;  %v2129_v52 = vld [vmem:[#allocation8 + $0xb4] sm:$0xf] }
  0x79   :  { %1046 = vmatpush.bf16.msra.mxu1 %v1764_v57  ;;  %v2142_v57 = vld [vmem:[#allocation8 + $0x114] sm:$0xf0]  ;;  %v1784_v58 = vor.u32 %v2129_v52, %v1781_v55  ;;  %v1845_v52 = vld [vmem:[#allocation8 + $0x138] sm:$0xf0] }
  0x7a   :  { %v1828_v59 = vor.u32 %v2142_v57, %v1827_v56  ;;  %v1848_v56 = vor.u32 %v2145_v51, %v1845_v52  ;;  %v2175_v52 = vld [vmem:[#allocation10 + $0x20] sm:$0xff] }
  0x7c   :  { %1034 = vmatpush.bf16.msra.mxu0 %v1692_v61  ;;  %v1701_v61 = vld [vmem:[#allocation8 + $0x18] sm:$0xf0]  ;;  %1059 = vmatpush.bf16.msra.mxu2 %v1828_v59 }
  0x7d   :  { %1047 = vmatpush.bf16.msra.mxu1 %v1756_v63  ;;  %v1704_v63 = vor.u32 %v2109_v60, %v1701_v61  ;;  %v2163_v60 = vld [vmem:[#allocation8 + $0x1c4] sm:$0xf]  ;;  %v1917_v61 = vld [vmem:[#allocation8 + $0x1c8] sm:$0xf0] }
  0x80   :  { %1079 = vmatpush.bf16.msrb.mxu0 %v1752_v62  ;;  %v1899_v62 = vld [vmem:[#allocation8 + $0x1a0] sm:$0xf] }
  0x81   :  { %1092 = vmatpush.bf16.msrb.mxu1 %v1816_v8  ;;  %v1900_v3 = vor.u32 %v2160_v0, %v1899_v62  ;;  %v1820_v8 = vor.u32 %v2140_v6, %v1819_v5  ;;  %v2161_v5 = vld [vmem:[#allocation8 + $0x1b4] sm:$0xf]  ;;  %v1909_v6 = vld [vmem:[#allocation8 + $0x1b8] sm:$0xf0] }
  0x82   :  { %v1912_v7 = vor.u32 %v2161_v5, %v1909_v6 }
  0x83   :  { %1071 = vmatpush.bf16.msra.mxu3 %v1900_v3  ;;  %1060 = vmatpush.bf16.msra.mxu2 %v1820_v8  ;;  %v2141_v8 = vld [vmem:[#allocation8 + $0x114] sm:$0xf] }
  0x84   :  { %1080 = vmatpush.bf16.msrb.mxu0 %v1744_v2  ;;  %v1773_v2 = vld [vmem:[#allocation8 + $0xa8] sm:$0xf0] }
  0x85   :  { %1093 = vmatpush.bf16.msrb.mxu1 %v1808_v20  ;;  %v1776_v4 = vor.u32 %v2127_v1, %v1773_v2  ;;  %v2491_v20 = vld [vmem:[#allocation7] sm:$0xf]  ;;  %v2143_v1 = vld [vmem:[#allocation8 + $0x124] sm:$0xf]  ;;  %v1837_v2 = vld [vmem:[#allocation8 + $0x128] sm:$0xf0] }
  0x86   :  { %v191_v45 = vperm.slane %v2491_v20, 1  ;;  %v1840_v3 = vor.u32 %v2143_v1, %v1837_v2  ;;  %v2184_v1 = vld [vmem:[#allocation10 + $0x68] sm:$0xff] }
  0x87   :  { %1105 = vmatpush.bf16.msrb.mxu2 %v1880_v13  ;;  %v1901_v13 = vld [vmem:[#allocation8 + $0x1a8] sm:$0xf0] }
  0x88   :  { %1081 = vmatpush.bf16.msrb.mxu0 %v1736_v14  ;;  %v1891_v14 = vld [vmem:[#allocation8 + $0x190] sm:$0xf] }
  0x89   :  { %1094 = vmatpush.bf16.msrb.mxu1 %v1800_v32  ;;  %v1892_v17 = vor.u32 %v2158_v15, %v1891_v14  ;;  %v190_v32 = vperm.slane %v2491_v20, 0  ;;  %v2139_v14 = vld [vmem:[#allocation8 + $0x104] sm:$0xf]  ;;  %v1821_v15 = vld [vmem:[#allocation8 + $0x108] sm:$0xf0] }
  0x8a   :  { %v1824_v22 = vor.u32 %v2139_v14, %v1821_v15 }
  0x8b   :  { %1072 = vmatpush.bf16.msra.mxu3 %v1892_v17  ;;  %1106 = vmatpush.bf16.msrb.mxu2 %v1872_v24  ;;  %v1904_v17 = vor.u32 %v2159_v10, %v1901_v13  ;;  %v2155_v24 = vld [vmem:[#allocation8 + $0x184] sm:$0xf]  ;;  %v2180_v13 = vld [vmem:[#allocation10 + $0x48] sm:$0xff] }
  0x8c   :  { %1082 = vmatpush.bf16.msrb.mxu0 %v1728_v26  ;;  %v2123_v26 = vld [vmem:[#allocation8 + $0x84] sm:$0xf] }
  0x8d   :  { %1095 = vmatpush.bf16.msrb.mxu1 %v1792_v42  ;;  %v1760_v29 = vor.u32 %v2123_v26, %v1757_v27  ;;  %v1853_v42 = vld [vmem:[#allocation8 + $0x148] sm:$0xf0]  ;;  %v1888_v26 = vor.u32 %v2155_v24, %v1885_v25  ;;  %v192_v27 = vperm.slane %v2491_v20, 2 }
  0x8e   :  { %v1856_v44 = vor.u32 %v2147_v41, %v1853_v42 }
  0x8f   :  { %1073 = vmatpush.bf16.msra.mxu3 %v1884_v28  ;;  %1107 = vmatpush.bf16.msrb.mxu2 %v1864_v36 }
  0x90   :  { %1083 = vmatpush.bf16.msrb.mxu0 %v1720_v37  ;;  %v2167_v37 = vld [vmem:[#allocation8 + $0x1e4] sm:$0xf] }
  0x91   :  { %1096 = vmatpush.bf16.msrb.mxu1 %v1784_v58  ;;  %v1936_v40 = vor.u32 %v2167_v37, %v1933_v38 }
  0x93   :  { %1118 = vmatpush.bf16.msrb.mxu3 %v1944_v33  ;;  %1108 = vmatpush.bf16.msrb.mxu2 %v1856_v44 }
  0x94   :  { %1084 = vmatpush.bf16.msrb.mxu0 %v1712_v48 }
  0x95   :  { %1097 = vmatpush.bf16.msrb.mxu1 %v1776_v4 }
  0x97   :  { %1119 = vmatpush.bf16.msrb.mxu3 %v1936_v40  ;;  %1109 = vmatpush.bf16.msrb.mxu2 %v1848_v56  ;;  %v2186_v56 = vld [vmem:[#allocation10 + $0x78] sm:$0xff] }
  0x98   :  { %1085 = vmatpush.bf16.msrb.mxu0 %v1704_v63  ;;  %v1920_v63 = vor.u32 %v2163_v60, %v1917_v61  ;;  %v2173_v60 = vld [vmem:[#allocation10 + $0x10] sm:$0xff] }
  0x99   :  { %1098 = vmatpush.bf16.msrb.mxu1 %v1768_v19  ;;  %v2157_v19 = vld [vmem:[#allocation8 + $0x194] sm:$0xf] }
  0x9a   :  { %v1896_v23 = vor.u32 %v2157_v19, %v1893_v21  ;;  %v2185_v61 = vld [vmem:[#allocation10 + $0x70] sm:$0xff] }
  0x9b   :  { %1120 = vmatpush.bf16.msrb.mxu3 %v1928_v49  ;;  %1110 = vmatpush.bf16.msrb.mxu2 %v1840_v3  ;;  %v2176_v49 = vld [vmem:[#allocation10 + $0x28] sm:$0xff]  ;;  %v2171_v3 = vld [vmem:[#allocation10] sm:$0xff] }
  0x9c   :  { %1086 = vmatpush.bf16.msrb.mxu0 %v1696_v12  ;;  %v1832_v12 = vor.u32 %v2141_v8, %v1829_v9  ;;  %v2182_v9 = vld [vmem:[#allocation10 + $0x58] sm:$0xff] }
  0x9d   :  { %1099 = vmatpush.bf16.msrb.mxu1 %v1760_v29 }
  0x9f   :  { %1121 = vmatpush.bf16.msrb.mxu3 %v1920_v63  ;;  %1111 = vmatpush.bf16.msrb.mxu2 %v1832_v12 }
  0xa3   :  { %1122 = vmatpush.bf16.msrb.mxu3 %v1912_v7  ;;  %1112 = vmatpush.bf16.msrb.mxu2 %v1824_v22 }
  0xa7   :  { %1123 = vmatpush.bf16.msrb.mxu3 %v1904_v17 }
  0xab   :  { %1124 = vmatpush.bf16.msrb.mxu3 %v1896_v23 }
  0xaf   :  { %1125 = vmatpush.bf16.msrb.mxu3 %v1888_v26  ;;  %v2194_v26 = vld [vmem:[#allocation11 + $0x38] sm:$0xff] }
  0xbc   :  { %v534_v50 = vpop.f32.mrf.mxu0 }
  0xbd   :  { %v535_v39 = vadd.f32 %v534_v50, %v190_v32  ;;  %v547_v54 = vpop.f32.mrf.mxu1  ;;  %v193_v32 = vperm.slane %v2491_v20, 3  ;;  %v2178_v20 = vld [vmem:[#allocation10 + $0x38] sm:$0xff] }
  0xbf   :  { %v548_v43 = vadd.f32 %v547_v54, %v535_v39 }
  0xc1   :  { %v629_v48 = vmax.f32 %v548_v43, 0.0 }
  0xc3   :  { %v633_v53 = vpack.c.bf16 %v629_v48, %v629_v48 }
  0xc4   :  { %v560_v55 = vpop.f32.mrf.mxu2  ;;  %v536_v59 = vpop.f32.mrf.mxu0 }
  0xc5   :  { %v561_v57 = vadd.f32 %v560_v55, %v191_v45  ;;  %v573_v58 = vpop.f32.mrf.mxu3  ;;  %1035 = vmatmul.bf16.vlgmr.msra.gmra.mxu0 %v633_v53  ;;  %v549_v62 = vpop.f32.mrf.mxu1  ;;  %v2174_v55 = vld [vmem:[#allocation10 + $0x18] sm:$0xff] }
  0xc6   :  { %1303 = vmatpush.bf16.msra.mxu0 %v2178_v20 }
  0xc7   :  { %v574_v0 = vadd.f32 %v573_v58, %v561_v57  ;;  %v701_v57 = vld [vmem:[%s2513_s4] sm:$0x3] }
  0xc8   :  { %v703_v58 = vperm.slane %v701_v57, 0  ;;  %v704_v12 = vperm.slane %v701_v57, 1  ;;  %v2188_v57 = vld [vmem:[#allocation11 + $0x8] sm:$0xff] }
  0xc9   :  { %v630_v4 = vmax.f32 %v574_v0, 0.0  ;;  %v2172_v0 = vld [vmem:[#allocation10 + $0x8] sm:$0xff] }
  0xca   :  { %1304 = vmatpush.bf16.msra.mxu0 %v2177_v47 }
  0xcb   :  { %v634_v11 = vpack.c.bf16 %v630_v4, %v630_v4  ;;  %v2183_v4 = vld [vmem:[#allocation10 + $0x60] sm:$0xff] }
  0xcc   :  { %v562_v16 = vpop.f32.mrf.mxu2 }
  0xcd   :  { %1048 = vmatmul.bf16.vlgmr.msra.gmra.mxu1 %v634_v11  ;;  %v575_v18 = vpop.f32.mrf.mxu3 }
  0xce   :  { %1305 = vmatpush.bf16.msra.mxu0 %v2176_v49  ;;  %1316 = vmatpush.bf16.msra.mxu1 %v2186_v56  ;;  %v2179_v18 = vld [vmem:[#allocation10 + $0x40] sm:$0xff]  ;;  %v2189_v56 = vld [vmem:[#allocation11 + $0x10] sm:$0xff] }
  0xd2   :  { %1306 = vmatpush.bf16.msra.mxu0 %v2175_v52  ;;  %1317 = vmatpush.bf16.msra.mxu1 %v2185_v61  ;;  %v2192_v52 = vld [vmem:[#allocation11 + $0x28] sm:$0xff]  ;;  %v2208_v61 = vld [vmem:[%s2515_s6] ss:$0 sm:$0xff] }
  0xd5   :  { %1087 = vmatmul.bf16.vlgmr.msrb.gmra.mxu0 %v633_v53 }
  0xd6   :  { %1307 = vmatpush.bf16.msra.mxu0 %v2174_v55  ;;  %1318 = vmatpush.bf16.msra.mxu1 %v2184_v1  ;;  %v2190_v55 = vld [vmem:[#allocation11 + $0x18] sm:$0xff] }
  0xda   :  { %1308 = vmatpush.bf16.msra.mxu0 %v2173_v60  ;;  %1319 = vmatpush.bf16.msra.mxu1 %v2183_v4  ;;  %v2209_v4 = vld [vmem:[%s2517_s8] ss:$0 sm:$0xff] }
  0xdc   :  { %v586_v28 = vpop.f32.mrf.mxu0 }
  0xdd   :  { %v587_v29 = vadd.f32 %v586_v28, %v192_v27  ;;  %v599_v30 = vpop.f32.mrf.mxu1  ;;  %1100 = vmatmul.bf16.vlgmr.msrb.gmra.mxu1 %v634_v11  ;;  %v2181_v11 = vld [vmem:[#allocation10 + $0x50] sm:$0xff] }
  0xde   :  { %1309 = vmatpush.bf16.msra.mxu0 %v2172_v0  ;;  %1320 = vmatpush.bf16.msra.mxu1 %v2182_v9 }
  0xdf   :  { %v600_v31 = vadd.f32 %v599_v30, %v587_v29 }
  0xe1   :  { %v631_v33 = vmax.f32 %v600_v31, 0.0 }
  0xe2   :  { %1310 = vmatpush.bf16.msra.mxu0 %v2171_v3  ;;  %1321 = vmatpush.bf16.msra.mxu1 %v2181_v11 }
  0xe3   :  { %v635_v34 = vpack.c.bf16 %v631_v33, %v631_v33 }
  0xe4   :  { %v612_v35 = vpop.f32.mrf.mxu2  ;;  %v588_v37 = vpop.f32.mrf.mxu0 }
  0xe5   :  { %v613_v36 = vadd.f32 %v612_v35, %v193_v32  ;;  %v625_v50 = vpop.f32.mrf.mxu3  ;;  %v601_v38 = vpop.f32.mrf.mxu1  ;;  %1061 = vmatmul.bf16.vlgmr.msra.gmra.mxu2 %v635_v34 }
  0xe6   :  { %1322 = vmatpush.bf16.msra.mxu1 %v2180_v13  ;;  %1399 = vmatpush.bf16.msra.mxu2 %v2194_v26 }
  0xe7   :  { %v626_v39 = vadd.f32 %v625_v50, %v613_v36 }
  0xe9   :  { %v632_v54 = vmax.f32 %v626_v39, 0.0 }
  0xea   :  { %1323 = vmatpush.bf16.msra.mxu1 %v2179_v18 }
  0xeb   :  { %v636_v40 = vpack.c.bf16 %v632_v54, %v632_v54 }
  0xec   :  { %v614_v41 = vpop.f32.mrf.mxu2 }
  0xed   :  { %v627_v42 = vpop.f32.mrf.mxu3  ;;  %1074 = vmatmul.bf16.vlgmr.msra.gmra.mxu3 %v636_v40 }
  0xf5   :  { %1113 = vmatmul.bf16.vlgmr.msrb.gmra.mxu2 %v635_v34 }
  0xfd   :  { %1126 = vmatmul.bf16.vlgmr.msrb.gmra.mxu3 %v636_v40 }
 0x142   :  { %v1036_v43 = vpop.f32.mrf.mxu0 }
 0x143   :  { %v1037_v62 = vadd.f32 %v1036_v43, %v703_v58  ;;  %v2187_v58 = vld [vmem:[#allocation11] sm:$0xff] }
 0x14a   :  { %v1049_v44 = vpop.f32.mrf.mxu1  ;;  %v1038_v45 = vpop.f32.mrf.mxu0 }
 0x14b   :  { %v1050_v2 = vadd.f32 %v1049_v44, %v1037_v62 }
 0x152   :  { %v1051_v46 = vpop.f32.mrf.mxu1  ;;  %v1088_v48 = vpop.f32.mrf.mxu0 }
 0x153   :  { %v1089_v17 = vadd.f32 %v1088_v48, %v704_v12 }
 0x15a   :  { %v1101_v51 = vpop.f32.mrf.mxu1  ;;  %v1090_v53 = vpop.f32.mrf.mxu0 }
 0x15b   :  { %v1102_v21 = vadd.f32 %v1101_v51, %v1089_v17  ;;  %v2193_v51 = vld [vmem:[#allocation11 + $0x30] sm:$0xff]  ;;  %v2191_v53 = vld [vmem:[#allocation11 + $0x20] sm:$0xff] }
 0x15c   :  { %1400 = vmatpush.bf16.msra.mxu2 %v2193_v51 }
 0x160   :  { %1401 = vmatpush.bf16.msra.mxu2 %v2192_v52 }
 0x162   :  { %v1103_v59 = vpop.f32.mrf.mxu1 }
 0x164   :  { %1402 = vmatpush.bf16.msra.mxu2 %v2191_v53 }
 0x168   :  { %v1062_v63 = vpop.f32.mrf.mxu2  ;;  %1403 = vmatpush.bf16.msra.mxu2 %v2190_v55 }
 0x169   :  { %v1063_v5 = vadd.f32 %v1062_v63, %v1050_v2 }
 0x16c   :  { %1404 = vmatpush.bf16.msra.mxu2 %v2189_v56 }
 0x170   :  { %v1075_v6 = vpop.f32.mrf.mxu3  ;;  %v1064_v8 = vpop.f32.mrf.mxu2  ;;  %1405 = vmatpush.bf16.msra.mxu2 %v2188_v57 }
 0x171   :  { %v1076_v7 = vadd.f32 %v1075_v6, %v1063_v5 }
 0x173   :  { %v1945_v10 = vmul.f32 -1.442695, %v1076_v7 }
 0x174   :  { %1406 = vmatpush.bf16.msra.mxu2 %v2187_v58 }
 0x175   :  { %2210 = vpow2.f32 %v1945_v10 }
 0x178   :  { %v1077_v14 = vpop.f32.mrf.mxu3  ;;  %v1114_v15 = vpop.f32.mrf.mxu2 }
 0x179   :  { %v1115_v22 = vadd.f32 %v1114_v15, %v1102_v21 }
 0x17b   :  { %v2211_v16 = vpop.eup %2210 }
 0x17c   :  { %v1137_v19 = vadd.f32 1.0, %v2211_v16 }
 0x17e   :  { %2212 = vrcp.f32 %v1137_v19  ;;  %v1150_v32 = vand.u32 2147483648, %v1137_v19  ;;  %v1148_v34 = vand.u32 2147483647, %v1137_v19  ;;  %vm1144_vm1 = vweird.f32 %v1137_v19 }
 0x180   :  { %v1127_v23 = vpop.f32.mrf.mxu3  ;;  %v1116_v25 = vpop.f32.mrf.mxu2  ;;  %v1151_v37 = vor.u32 1.1754944e-38, %v1150_v32  ;;  %vm1149_vm3 = vcmp.eq.f32.partialorder %v1148_v34, 8.507059e+37 }
 0x181   :  { %v1128_v24 = vadd.f32 %v1127_v23, %v1115_v22 }
 0x183   :  { %v1946_v27 = vmul.f32 -1.442695, %v1128_v24 }
 0x184   :  { %v2213_v28 = vpop.eup %2212 }
 0x185   :  { %v1140_v29 = vmul.f32 %v2213_v28, %v1137_v19  ;;  %2214 = vpow2.f32 %v1946_v27  ;;  %vm1145_vm0 = vweird.f32 %v2213_v28 }
 0x186   :  { %vm1146_vm2 = vmor %vm1144_vm1, %vm1145_vm0 }
 0x187   :  { %v1141_v30 = vsub.f32 1.0, %v1140_v29 }
 0x188   :  { %v1129_v31 = vpop.f32.mrf.mxu3 }
 0x189   :  { %v1142_v33 = vmul.f32 %v2213_v28, %v1141_v30 }
 0x18b   :  { %v2215_v35 = vpop.eup %2214  ;;  %v1143_v36 = vadd.f32 %v2213_v28, %v1142_v33 }
 0x18c   :  { %v1138_v50 = vadd.f32 1.0, %v2215_v35 }
 0x18d   :  { %v1147_v38 = vsel %vm1146_vm2, %v2213_v28, %v1143_v36 }
 0x18e   :  { %2216 = vrcp.f32 %v1138_v50  ;;  %v1152_v39 = vsel %vm1149_vm3, %v1151_v37, %v1147_v38  ;;  %v1165_v43 = vand.u32 2147483648, %v1138_v50  ;;  %v1163_v45 = vand.u32 2147483647, %v1138_v50 }
 0x18f   :  { %v1169_v54 = vpack.c.bf16 %v1152_v39, %v1152_v39  ;;  %vm1159_vm5 = vweird.f32 %v1138_v50 }
 0x190   :  { %v1166_v46 = vor.u32 1.1754944e-38, %v1165_v43  ;;  %vm1164_vm7 = vcmp.eq.f32.partialorder %v1163_v45, 8.507059e+37 }
 0x191   :  { %1311 = vmatmul.bf16.vlgmr.msra.gmra.mxu0 %v1169_v54 }
 0x194   :  { %v2217_v40 = vpop.eup %2216 }
 0x195   :  { %v1155_v41 = vmul.f32 %v2217_v40, %v1138_v50  ;;  %vm1160_vm4 = vweird.f32 %v2217_v40 }
 0x196   :  { %vm1161_vm6 = vmor %vm1159_vm5, %vm1160_vm4 }
 0x197   :  { %v1156_v42 = vsub.f32 1.0, %v1155_v41 }
 0x199   :  { %v1157_v44 = vmul.f32 %v2217_v40, %v1156_v42 }
 0x19b   :  { %v1158_v20 = vadd.f32 %v2217_v40, %v1157_v44 }
 0x19d   :  { %v1162_v47 = vsel %vm1161_vm6, %v2217_v40, %v1158_v20 }
 0x19e   :  { %v1167_v48 = vsel %vm1164_vm7, %v1166_v46, %v1162_v47 }
 0x19f   :  { %v1170_v49 = vpack.c.bf16 %v1167_v48, %v1167_v48 }
 0x1a1   :  { %1324 = vmatmul.bf16.vlgmr.msra.gmra.mxu1 %v1170_v49 }
 0x20e   :  { %v1312_v59 = vpop.f32.mrf.mxu0 }
 0x20f   :  { %v1313_v62 = vadd.f32 %v2208_v61, %v1312_v59 }
 0x216   :  { %v1314_v60 = vpop.f32.mrf.mxu0 }
 0x21e   :  { %v1325_v63 = vpop.f32.mrf.mxu1 }
 0x21f   :  { %v1326_v0 = vadd.f32 %v1325_v63, %v1313_v62 }
 0x221   :  { %2218 = vtanh.f32 %v1326_v0 }
 0x226   :  { %v1327_v1 = vpop.f32.mrf.mxu1 }
 0x227   :  { %v2219_v2 = vpop.eup %2218 }
 0x228   :  { %v1330_v3 = vpack.c.bf16 %v2219_v2, %v2219_v2 }
 0x22a   :  { %1407 = vmatmul.bf16.vlgmr.msra.gmra.mxu2 %v1330_v3 }
 0x2ad   :  { %v1408_v5 = vpop.f32.mrf.mxu2 }
 0x2ae   :  { %v1409_v6 = vadd.f32 %v2209_v4, %v1408_v5 }
 0x2b0   :  { %1412 = vst [vmem:[#allocation13] sm:$0xff] %v1409_v6 }
 0x2b1   :  { %1423 = dma.vmem_to_hbm [thread:$0]  %s1419_s23, 128, %s1421_s26, [#allocation4]  }
 0x2b5   :  { %v1410_v7 = vpop.f32.mrf.mxu2 }
 0x2b6   :  { %2396 = dma.done.wait [#allocation4], 128  }
 0x2b7   :  { %2397 = vsyncadd [#allocation4], 4294967168 }
 0x2b8   :  { %1428 = vsyncpa [#allocation3], 1 }
 0x2b9   :  { %1429 = vsyncpa [#allocation6], 1 }
 0x2ba   :  { %1430 = vsyncpa [#allocation9], 1 }
 0x2bb   :  { %1431 = vsyncpa [#allocation12], 1 }
 0x2bc   :  { %1432 = vsyncpa [#allocation4], 1 }

</bundles_post_ra>
